<compile_context>
chip_gen: v7x
topology: tpu7x:2x2x1
jax: 0.10.0
libtpu: 0.0.40
codegen_flags: <defaults>
</compile_context>

<pallas_src>
import functools

import jax
import jax.numpy as jnp
from jax.experimental import pallas as pl
from jax.experimental.pallas import tpu as pltpu


def _round_up(x, m):
    return int(pl.cdiv(x, m) * m)


def _fold_bn(p, eps):
    """Fold eval-mode BatchNorm into the conv weight (scale) and a bias (shift)."""
    scale = p["gamma"] * jax.lax.rsqrt(p["var"] + eps)            # (C2,)
    w = p["weight"] * scale[:, None, None, None]                   # (C2, C1, k, k)
    shift = (p["beta"] - p["mean"] * scale).astype(jnp.float32)    # (C2,)
    return w, shift


# ---------------------------------------------------------------------------
# Fused 1x1 conv + BN(shift) + SiLU:  out(C2, TL) = SiLU(W(C2,C1) @ X(C1,TL) + b)
# ---------------------------------------------------------------------------
def _pw_conv_kernel(x_ref, w_ref, shift_ref, o_ref):
    # x: (1, C1, TL) bf16 | w: (C2, C1) bf16 | shift: (C2, 1) f32 | o: (1, C2, TL)
    acc = jnp.dot(w_ref[...], x_ref[0], preferred_element_type=jnp.float32)
    y = acc + shift_ref[...]                      # BN shift (scale folded into W)
    y = y * jax.nn.sigmoid(y)                     # SiLU in f32
    o_ref[0] = y.astype(o_ref.dtype)              # lane-dense store (TL >= 128)


def _conv1x1_bn_silu(x, p, *, eps=1e-5, out_dtype=jnp.bfloat16, max_tl=512):
    """x: (N, C1, L=H*W) bf16 -> (N, C2, L) out_dtype."""
    N, C1, L = x.shape
    C2 = p["weight"].shape[0]

    w, shift = _fold_bn(p, eps)
    w2 = w.reshape(C2, C1).astype(jnp.bfloat16)
    shift = shift.reshape(C2, 1)

    TL = min(max_tl, _round_up(L, 128))           # lane tile, multiple of 128
    Lp = _round_up(L, TL)                         # padded tail instead of asserts
    xp = x if Lp == L else jnp.pad(x, ((0, 0), (0, 0), (0, Lp - L)))

    out = pl.pallas_call(
        _pw_conv_kernel,
        out_shape=jax.ShapeDtypeStruct((N, C2, Lp), out_dtype),
        grid_spec=pltpu.PrefetchScalarGridSpec(
            num_scalar_prefetch=0,
            grid=(N, Lp // TL),
            in_specs=[
                pl.BlockSpec((1, C1, TL), lambda n, l: (n, 0, l)),
                pl.BlockSpec((C2, C1), lambda n, l: (0, 0)),
                pl.BlockSpec((C2, 1), lambda n, l: (0, 0)),
            ],
            out_specs=pl.BlockSpec((1, C2, TL), lambda n, l: (n, 0, l)),
        ),
        compiler_params=pltpu.CompilerParams(
            dimension_semantics=("parallel", "parallel")),
    )(xp, w2, shift)
    return out if Lp == L else out[:, :, :L]


# ---------------------------------------------------------------------------
# Fused 3x3 (stride 1, pad k//2) conv + BN(shift) + SiLU, im2col-free.
# The padded image is flattened with row stride Wp; each tap (kh, kw) is then a
# constant lane offset kh*Wp + kw, so the 9 taps are static slices of the
# VMEM-resident image and accumulate into an f32 register accumulator.
# ---------------------------------------------------------------------------
def _conv3x3_kernel(x_ref, w_ref, shift_ref, o_ref, *, k, wp):
    # x: (1, C1, Lin) bf16  | w: (k*k, C2, C1) bf16 (BN scale folded)
    # shift: (C2, 1) f32    | o: (1, C2, P) with P = H * wp
    P = o_ref.shape[2]
    xi = x_ref[0]                                           # (C1, Lin), read once
    acc = jnp.zeros((o_ref.shape[1], P), jnp.float32)
    for kh in range(k):
        for kw in range(k):
            off = kh * wp + kw                              # static lane offset
            win = xi[:, off:off + P]                        # (C1, P)
            acc = acc + jnp.dot(w_ref[kh * k + kw], win,
                                preferred_element_type=jnp.float32)
    y = acc + shift_ref[...]
    y = y * jax.nn.sigmoid(y)
    o_ref[0] = y.astype(o_ref.dtype)                        # lane-dense (P >= 256)


def _conv3x3_bn_silu(x, p, *, H, W, eps=1e-5, out_dtype=jnp.bfloat16):
    """3x3 conv, stride 1, pad 1. x: (N, C1, H*W) bf16 -> (N, C2, H*W)."""
    N, C1, L = x.shape
    assert L == H * W
    C2, _, k, _ = p["weight"].shape
    pad = k // 2
    Hp, Wp = H + 2 * pad, W + 2 * pad
    P = H * Wp                                  # output positions, padded-row stride
    max_off = (k - 1) * Wp + (k - 1)
    Lin = _round_up(P + max_off, 128)

    # Zero-pad spatially once, flatten with row stride Wp, pad the tail (glue).
    xs = x.reshape(N, C1, H, W)
    xs = jnp.pad(xs, ((0, 0), (0, 0), (pad, pad), (pad, pad)))
    xs = xs.reshape(N, C1, Hp * Wp)
    xs = jnp.pad(xs, ((0, 0), (0, 0), (0, Lin - Hp * Wp)))

    w, shift = _fold_bn(p, eps)
    w_t = jnp.transpose(w, (2, 3, 0, 1)).reshape(k * k, C2, C1).astype(jnp.bfloat16)
    shift = shift.reshape(C2, 1)

    kernel = functools.partial(_conv3x3_kernel, k=k, wp=Wp)
    out = pl.pallas_call(
        kernel,
        out_shape=jax.ShapeDtypeStruct((N, C2, P), out_dtype),
        grid_spec=pltpu.PrefetchScalarGridSpec(
            num_scalar_prefetch=0,
            grid=(N,),
            in_specs=[
                pl.BlockSpec((1, C1, Lin), lambda n: (n, 0, 0)),
                pl.BlockSpec((k * k, C2, C1), lambda n: (0, 0, 0)),
                pl.BlockSpec((C2, 1), lambda n: (0, 0)),
            ],
            out_specs=pl.BlockSpec((1, C2, P), lambda n: (n, 0, 0)),
        ),
        compiler_params=pltpu.CompilerParams(
            dimension_semantics=("parallel",)),
    )(xs, w_t, shift)
    # Drop the 2 garbage columns per padded-stride row (cheap glue slice).
    out = out.reshape(N, C2, H, Wp)[:, :, :, :W].reshape(N, C2, H * W)
    return out


# ---------------------------------------------------------------------------
# C2f forward (matches the PyTorch module's forward exactly, eval-mode BN)
# ---------------------------------------------------------------------------
def c2f_forward(x_nchw, params, *, n=1, shortcut=False, eps=1e-5):
    N, C1, H, W = x_nchw.shape
    L = H * W
    # PyTorch NCHW with spatial flattened: channels-first kept end-to-end,
    # so there is no NCHW<->NHWC transpose anywhere.
    x = x_nchw.reshape(N, C1, L).astype(jnp.bfloat16)

    y = _conv1x1_bn_silu(x, params["cv1"], eps=eps)            # cv1 (1x1)
    c = y.shape[1] // 2
    x1, x2 = y[:, :c, :], y[:, c:, :]                          # chunk(2, dim=1)

    parts = [x1]
    for i in range(n):
        b = params["m"][i]
        h = _conv1x1_bn_silu(x2, b["cv1"], eps=eps)            # Bottleneck.cv1 (1x1)
        h = _conv3x3_bn_silu(h, b["cv2"], H=H, W=W, eps=eps)   # Bottleneck.cv2 (3x3)
        if shortcut and x2.shape[1] == h.shape[1]:
            h = x2 + h                                         # residual (glue add)
        x2 = h
        parts.append(x2)

    ycat = jnp.concatenate(parts, axis=1)                      # torch.cat(y, 1) (glue)
    out = _conv1x1_bn_silu(ycat, params["cv2"], eps=eps, out_dtype=jnp.float32)
    return out.reshape(N, out.shape[1], H, W)


# ---------------------------------------------------------------------------
# Pure-JAX f32 reference (for correctness check)
# ---------------------------------------------------------------------------
def _conv_ref(x, p, *, pad=0, eps=1e-5):
    y = jax.lax.conv_general_dilated(
        x, p["weight"], (1, 1), ((pad, pad), (pad, pad)),
        dimension_numbers=("NCHW", "OIHW", "NCHW"))
    scale = (p["gamma"] / jnp.sqrt(p["var"] + eps)).reshape(1, -1, 1, 1)
    shift = (p["beta"] - p["mean"] * p["gamma"]
             / jnp.sqrt(p["var"] + eps)).reshape(1, -1, 1, 1)
    y = y * scale + shift
    return y * jax.nn.sigmoid(y)


def _c2f_ref(x, params, *, n=1, shortcut=False, eps=1e-5):
    y = _conv_ref(x, params["cv1"], pad=0, eps=eps)
    c = y.shape[1] // 2
    x1, x2 = y[:, :c], y[:, c:]
    parts = [x1]
    for i in range(n):
        b = params["m"][i]
        h = _conv_ref(x2, b["cv1"], pad=0, eps=eps)
        h = _conv_ref(h, b["cv2"], pad=1, eps=eps)
        if shortcut and x2.shape[1] == h.shape[1]:
            h = x2 + h
        x2 = h
        parts.append(x2)
    return _conv_ref(jnp.concatenate(parts, axis=1), params["cv2"], pad=0, eps=eps)


def _make_conv_params(key, c_in, c_out, k):
    kw_, kg, kb, km, kv = jax.random.split(key, 5)
    fan_in = c_in * k * k
    return dict(
        weight=jax.random.normal(kw_, (c_out, c_in, k, k), jnp.float32) / (fan_in ** 0.5),
        gamma=1.0 + 0.1 * jax.random.normal(kg, (c_out,), jnp.float32),
        beta=0.1 * jax.random.normal(kb, (c_out,), jnp.float32),
        mean=0.1 * jax.random.normal(km, (c_out,), jnp.float32),
        var=1.0 + 0.5 * jax.random.uniform(kv, (c_out,), jnp.float32),
    )


if __name__ == "__main__":
    # C2f(c1=4, c2=8, n=1, shortcut=True) on x: (2, 4, 16, 16)
    N, c1, c2, H, W = 2, 4, 8, 16, 16
    n_bottleneck, shortcut = 1, True
    c_hidden = c2 // 2                                   # int(c2 * e), e = 0.5

    key = jax.random.PRNGKey(0)
    kx, k_cv1, k_cv2, *k_m = jax.random.split(key, 3 + 2 * n_bottleneck)
    params = dict(
        cv1=_make_conv_params(k_cv1, c1, 2 * c_hidden, 1),
        cv2=_make_conv_params(k_cv2, 2 * c_hidden, c2, 1),
        m=[dict(cv1=_make_conv_params(k_m[2 * i], c_hidden, c_hidden, 1),
                cv2=_make_conv_params(k_m[2 * i + 1], c_hidden, c_hidden, 3))
           for i in range(n_bottleneck)],
    )
    x = jax.random.normal(kx, (N, c1, H, W), dtype=jnp.float32)

    fwd = jax.jit(functools.partial(c2f_forward, n=n_bottleneck, shortcut=shortcut))
    out = jax.block_until_ready(fwd(x, params))

    ref = _c2f_ref(x, params, n=n_bottleneck, shortcut=shortcut)
    assert out.shape == (N, c2, H, W), out.shape
    max_err = float(jnp.max(jnp.abs(out - ref)))
    # bf16 activations/weights with f32 accumulation -> percent-level tolerance.
    assert jnp.allclose(out, ref, atol=3e-2, rtol=3e-2), max_err
    print("KERNEL_OK")
</pallas_src>

<mosaic_0001>
module attributes {stable_mosaic.version = 11 : i64} {
  func.func @_pw_conv_kernel(%arg0: i32, %arg1: i32, %arg2: memref<1x4x256xbf16, #tpu.memory_space<vmem>>, %arg3: memref<8x4xbf16, #tpu.memory_space<vmem>>, %arg4: memref<8x1xf32, #tpu.memory_space<vmem>>, %arg5: memref<1x8x256xbf16, #tpu.memory_space<vmem>>) attributes {dimension_semantics = [#tpu.dimension_semantics<parallel>, #tpu.dimension_semantics<parallel>], iteration_bounds = array<i64: 2, 1>, scalar_prefetch = 0 : i64, scratch_operands = 0 : i64, tpu.core_type = #tpu.core_type<tc>, window_params = [{transform_indices = @transform_0, window_bounds = array<i64: 1, 4, 256>}, {pipeline_mode = #tpu.pipeline_mode<synchronous>, transform_indices = @transform_1, window_bounds = array<i64: 8, 4>}, {pipeline_mode = #tpu.pipeline_mode<synchronous>, transform_indices = @transform_2, window_bounds = array<i64: 8, 1>}, {transform_indices = @transform_3, window_bounds = array<i64: 1, 8, 256>}]} {
    %c0 = arith.constant 0 : index
    %c0_0 = arith.constant 0 : index
    %0 = vector.load %arg3[%c0, %c0_0] : memref<8x4xbf16, #tpu.memory_space<vmem>>, vector<8x4xbf16>
    %c0_1 = arith.constant 0 : index
    %c0_2 = arith.constant 0 : index
    %c0_3 = arith.constant 0 : index
    %1 = vector.load %arg2[%c0_1, %c0_2, %c0_3] : memref<1x4x256xbf16, #tpu.memory_space<vmem>>, vector<1x4x256xbf16>
    %2 = vector.shape_cast %1 : vector<1x4x256xbf16> to vector<4x256xbf16>
    %cst = arith.constant dense<0.000000e+00> : vector<8x256xf32>
    %3 = tpu.matmul %0, %2, %cst {dimension_numbers = #tpu.dot_dimension_numbers<[1], [0], [0], [1], [0, 0, 1, 1], [], []>} : vector<8x4xbf16>, vector<4x256xbf16>, vector<8x256xf32> -> vector<8x256xf32>
    %c0_4 = arith.constant 0 : index
    %c0_5 = arith.constant 0 : index
    %4 = vector.load %arg4[%c0_4, %c0_5] : memref<8x1xf32, #tpu.memory_space<vmem>>, vector<8x1xf32>
    %5 = vector.broadcast %4 : vector<8x1xf32> to vector<8x256xf32>
    %6 = arith.addf %3, %5 : vector<8x256xf32>
    %7 = arith.negf %6 : vector<8x256xf32>
    %8 = math.exp %7 : vector<8x256xf32>
    %cst_6 = arith.constant 1.000000e+00 : f32
    %9 = vector.broadcast %cst_6 : f32 to vector<8x256xf32>
    %10 = arith.addf %9, %8 : vector<8x256xf32>
    %11 = arith.divf %9, %10 : vector<8x256xf32>
    %12 = arith.mulf %6, %11 : vector<8x256xf32>
    %13 = arith.truncf %12 : vector<8x256xf32> to vector<8x256xbf16>
    %c0_7 = arith.constant 0 : index
    %c0_8 = arith.constant 0 : index
    %c0_9 = arith.constant 0 : index
    %14 = vector.load %arg5[%c0_7, %c0_8, %c0_9] : memref<1x8x256xbf16, #tpu.memory_space<vmem>>, vector<1x8x256xbf16>
    %15 = vector.shape_cast %14 : vector<1x8x256xbf16> to vector<8x256xbf16>
    %16 = vector.shape_cast %13 : vector<8x256xbf16> to vector<1x8x256xbf16>
    tpu.vector_store %arg5[%c0_7, %c0_8, %c0_9], %16 {strides = array<i32>} : memref<1x8x256xbf16, #tpu.memory_space<vmem>>, vector<1x8x256xbf16>,
    return
  }
  func.func @transform_0(%arg0: i32, %arg1: i32) -> (i32, i32, i32) {
    %c0_i32 = arith.constant 0 : i32
    %c0_i32_0 = arith.constant 0 : i32
    return %arg0, %c0_i32, %arg1 : i32, i32, i32
  }
  func.func @transform_1(%arg0: i32, %arg1: i32) -> (i32, i32) {
    %c0_i32 = arith.constant 0 : i32
    %c0_i32_0 = arith.constant 0 : i32
    %c0_i32_1 = arith.constant 0 : i32
    return %c0_i32, %c0_i32_0 : i32, i32
  }
  func.func @transform_2(%arg0: i32, %arg1: i32) -> (i32, i32) {
    %c0_i32 = arith.constant 0 : i32
    %c0_i32_0 = arith.constant 0 : i32
    %c0_i32_1 = arith.constant 0 : i32
    return %c0_i32, %c0_i32_0 : i32, i32
  }
  func.func @transform_3(%arg0: i32, %arg1: i32) -> (i32, i32, i32) {
    %c0_i32 = arith.constant 0 : i32
    %c0_i32_0 = arith.constant 0 : i32
    return %arg0, %c0_i32, %arg1 : i32, i32, i32
  }
}

module attributes {stable_mosaic.version = 11 : i64} {
  func.func @_pw_conv_kernel(%arg0: i32, %arg1: i32, %arg2: memref<1x4x256xbf16, #tpu.memory_space<vmem>>, %arg3: memref<4x4xbf16, #tpu.memory_space<vmem>>, %arg4: memref<4x1xf32, #tpu.memory_space<vmem>>, %arg5: memref<1x4x256xbf16, #tpu.memory_space<vmem>>) attributes {dimension_semantics = [#tpu.dimension_semantics<parallel>, #tpu.dimension_semantics<parallel>], iteration_bounds = array<i64: 2, 1>, scalar_prefetch = 0 : i64, scratch_operands = 0 : i64, tpu.core_type = #tpu.core_type<tc>, window_params = [{transform_indices = @transform_0, window_bounds = array<i64: 1, 4, 256>}, {pipeline_mode = #tpu.pipeline_mode<synchronous>, transform_indices = @transform_1, window_bounds = array<i64: 4, 4>}, {pipeline_mode = #tpu.pipeline_mode<synchronous>, transform_indices = @transform_2, window_bounds = array<i64: 4, 1>}, {transform_indices = @transform_3, window_bounds = array<i64: 1, 4, 256>}]} {
    %c0 = arith.constant 0 : index
    %c0_0 = arith.constant 0 : index
    %0 = vector.load %arg3[%c0, %c0_0] : memref<4x4xbf16, #tpu.memory_space<vmem>>, vector<4x4xbf16>
    %c0_1 = arith.constant 0 : index
    %c0_2 = arith.constant 0 : index
    %c0_3 = arith.constant 0 : index
    %1 = vector.load %arg2[%c0_1, %c0_2, %c0_3] : memref<1x4x256xbf16, #tpu.memory_space<vmem>>, vector<1x4x256xbf16>
    %2 = vector.shape_cast %1 : vector<1x4x256xbf16> to vector<4x256xbf16>
    %cst = arith.constant dense<0.000000e+00> : vector<4x256xf32>
    %3 = tpu.matmul %0, %2, %cst {dimension_numbers = #tpu.dot_dimension_numbers<[1], [0], [0], [1], [0, 0, 1, 1], [], []>} : vector<4x4xbf16>, vector<4x256xbf16>, vector<4x256xf32> -> vector<4x256xf32>
    %c0_4 = arith.constant 0 : index
    %c0_5 = arith.constant 0 : index
    %4 = vector.load %arg4[%c0_4, %c0_5] : memref<4x1xf32, #tpu.memory_space<vmem>>, vector<4x1xf32>
    %5 = vector.broadcast %4 : vector<4x1xf32> to vector<4x256xf32>
    %6 = arith.addf %3, %5 : vector<4x256xf32>
    %7 = arith.negf %6 : vector<4x256xf32>
    %8 = math.exp %7 : vector<4x256xf32>
    %cst_6 = arith.constant 1.000000e+00 : f32
    %9 = vector.broadcast %cst_6 : f32 to vector<4x256xf32>
    %10 = arith.addf %9, %8 : vector<4x256xf32>
    %11 = arith.divf %9, %10 : vector<4x256xf32>
    %12 = arith.mulf %6, %11 : vector<4x256xf32>
    %13 = arith.truncf %12 : vector<4x256xf32> to vector<4x256xbf16>
    %c0_7 = arith.constant 0 : index
    %c0_8 = arith.constant 0 : index
    %c0_9 = arith.constant 0 : index
    %14 = vector.load %arg5[%c0_7, %c0_8, %c0_9] : memref<1x4x256xbf16, #tpu.memory_space<vmem>>, vector<1x4x256xbf16>
    %15 = vector.shape_cast %14 : vector<1x4x256xbf16> to vector<4x256xbf16>
    %16 = vector.shape_cast %13 : vector<4x256xbf16> to vector<1x4x256xbf16>
    tpu.vector_store %arg5[%c0_7, %c0_8, %c0_9], %16 {strides = array<i32>} : memref<1x4x256xbf16, #tpu.memory_space<vmem>>, vector<1x4x256xbf16>,
    return
  }
  func.func @transform_0(%arg0: i32, %arg1: i32) -> (i32, i32, i32) {
    %c0_i32 = arith.constant 0 : i32
    %c0_i32_0 = arith.constant 0 : i32
    return %arg0, %c0_i32, %arg1 : i32, i32, i32
  }
  func.func @transform_1(%arg0: i32, %arg1: i32) -> (i32, i32) {
    %c0_i32 = arith.constant 0 : i32
    %c0_i32_0 = arith.constant 0 : i32
    %c0_i32_1 = arith.constant 0 : i32
    return %c0_i32, %c0_i32_0 : i32, i32
  }
  func.func @transform_2(%arg0: i32, %arg1: i32) -> (i32, i32) {
    %c0_i32 = arith.constant 0 : i32
    %c0_i32_0 = arith.constant 0 : i32
    %c0_i32_1 = arith.constant 0 : i32
    return %c0_i32, %c0_i32_0 : i32, i32
  }
  func.func @transform_3(%arg0: i32, %arg1: i32) -> (i32, i32, i32) {
    %c0_i32 = arith.constant 0 : i32
    %c0_i32_0 = arith.constant 0 : i32
    return %arg0, %c0_i32, %arg1 : i32, i32, i32
  }
}

module attributes {stable_mosaic.version = 11 : i64} {
  func.func @_conv3x3_kernel(%arg0: i32, %arg1: memref<1x4x384xbf16, #tpu.memory_space<vmem>>, %arg2: memref<9x4x4xbf16, #tpu.memory_space<vmem>>, %arg3: memref<4x1xf32, #tpu.memory_space<vmem>>, %arg4: memref<1x4x288xbf16, #tpu.memory_space<vmem>>) attributes {dimension_semantics = [#tpu.dimension_semantics<parallel>], iteration_bounds = array<i64: 2>, scalar_prefetch = 0 : i64, scratch_operands = 0 : i64, tpu.core_type = #tpu.core_type<tc>, window_params = [{transform_indices = @transform_0, window_bounds = array<i64: 1, 4, 384>}, {pipeline_mode = #tpu.pipeline_mode<synchronous>, transform_indices = @transform_1, window_bounds = array<i64: 9, 4, 4>}, {pipeline_mode = #tpu.pipeline_mode<synchronous>, transform_indices = @transform_2, window_bounds = array<i64: 4, 1>}, {transform_indices = @transform_3, window_bounds = array<i64: 1, 4, 288>}]} {
    %c0 = arith.constant 0 : index
    %c0_0 = arith.constant 0 : index
    %c0_1 = arith.constant 0 : index
    %0 = vector.load %arg1[%c0, %c0_0, %c0_1] : memref<1x4x384xbf16, #tpu.memory_space<vmem>>, vector<1x4x384xbf16>
    %1 = vector.shape_cast %0 : vector<1x4x384xbf16> to vector<4x384xbf16>
    %cst = arith.constant 0.000000e+00 : f32
    %2 = vector.broadcast %cst : f32 to vector<4x288xf32>
    %3 = vector.extract_strided_slice %1 {offsets = [0, 0], sizes = [4, 288], strides = [1, 1]} : vector<4x384xbf16> to vector<4x288xbf16>
    %c0_2 = arith.constant 0 : index
    %c0_3 = arith.constant 0 : index
    %c0_4 = arith.constant 0 : index
    %4 = vector.load %arg2[%c0_2, %c0_3, %c0_4] : memref<9x4x4xbf16, #tpu.memory_space<vmem>>, vector<1x4x4xbf16>
    %5 = vector.shape_cast %4 : vector<1x4x4xbf16> to vector<4x4xbf16>
    %cst_5 = arith.constant dense<0.000000e+00> : vector<4x288xf32>
    %6 = tpu.matmul %5, %3, %cst_5 {dimension_numbers = #tpu.dot_dimension_numbers<[1], [0], [0], [1], [0, 0, 1, 1], [], []>} : vector<4x4xbf16>, vector<4x288xbf16>, vector<4x288xf32> -> vector<4x288xf32>
    %7 = arith.addf %2, %6 : vector<4x288xf32>
    %8 = vector.extract_strided_slice %1 {offsets = [0, 1], sizes = [4, 288], strides = [1, 1]} : vector<4x384xbf16> to vector<4x288xbf16>
    %c1 = arith.constant 1 : index
    %c0_6 = arith.constant 0 : index
    %c0_7 = arith.constant 0 : index
    %9 = vector.load %arg2[%c1, %c0_6, %c0_7] : memref<9x4x4xbf16, #tpu.memory_space<vmem>>, vector<1x4x4xbf16>
    %10 = vector.shape_cast %9 : vector<1x4x4xbf16> to vector<4x4xbf16>
    %cst_8 = arith.constant dense<0.000000e+00> : vector<4x288xf32>
    %11 = tpu.matmul %10, %8, %cst_8 {dimension_numbers = #tpu.dot_dimension_numbers<[1], [0], [0], [1], [0, 0, 1, 1], [], []>} : vector<4x4xbf16>, vector<4x288xbf16>, vector<4x288xf32> -> vector<4x288xf32>
    %12 = arith.addf %7, %11 : vector<4x288xf32>
    %13 = vector.extract_strided_slice %1 {offsets = [0, 2], sizes = [4, 288], strides = [1, 1]} : vector<4x384xbf16> to vector<4x288xbf16>
    %c2 = arith.constant 2 : index
    %c0_9 = arith.constant 0 : index
    %c0_10 = arith.constant 0 : index
    %14 = vector.load %arg2[%c2, %c0_9, %c0_10] : memref<9x4x4xbf16, #tpu.memory_space<vmem>>, vector<1x4x4xbf16>
    %15 = vector.shape_cast %14 : vector<1x4x4xbf16> to vector<4x4xbf16>
    %cst_11 = arith.constant dense<0.000000e+00> : vector<4x288xf32>
    %16 = tpu.matmul %15, %13, %cst_11 {dimension_numbers = #tpu.dot_dimension_numbers<[1], [0], [0], [1], [0, 0, 1, 1], [], []>} : vector<4x4xbf16>, vector<4x288xbf16>, vector<4x288xf32> -> vector<4x288xf32>
    %17 = arith.addf %12, %16 : vector<4x288xf32>
    %18 = vector.extract_strided_slice %1 {offsets = [0, 18], sizes = [4, 288], strides = [1, 1]} : vector<4x384xbf16> to vector<4x288xbf16>
    %c3 = arith.constant 3 : index
    %c0_12 = arith.constant 0 : index
    %c0_13 = arith.constant 0 : index
    %19 = vector.load %arg2[%c3, %c0_12, %c0_13] : memref<9x4x4xbf16, #tpu.memory_space<vmem>>, vector<1x4x4xbf16>
    %20 = vector.shape_cast %19 : vector<1x4x4xbf16> to vector<4x4xbf16>
    %cst_14 = arith.constant dense<0.000000e+00> : vector<4x288xf32>
    %21 = tpu.matmul %20, %18, %cst_14 {dimension_numbers = #tpu.dot_dimension_numbers<[1], [0], [0], [1], [0, 0, 1, 1], [], []>} : vector<4x4xbf16>, vector<4x288xbf16>, vector<4x288xf32> -> vector<4x288xf32>
    %22 = arith.addf %17, %21 : vector<4x288xf32>
    %23 = vector.extract_strided_slice %1 {offsets = [0, 19], sizes = [4, 288], strides = [1, 1]} : vector<4x384xbf16> to vector<4x288xbf16>
    %c4 = arith.constant 4 : index
    %c0_15 = arith.constant 0 : index
    %c0_16 = arith.constant 0 : index
    %24 = vector.load %arg2[%c4, %c0_15, %c0_16] : memref<9x4x4xbf16, #tpu.memory_space<vmem>>, vector<1x4x4xbf16>
    %25 = vector.shape_cast %24 : vector<1x4x4xbf16> to vector<4x4xbf16>
    %cst_17 = arith.constant dense<0.000000e+00> : vector<4x288xf32>
    %26 = tpu.matmul %25, %23, %cst_17 {dimension_numbers = #tpu.dot_dimension_numbers<[1], [0], [0], [1], [0, 0, 1, 1], [], []>} : vector<4x4xbf16>, vector<4x288xbf16>, vector<4x288xf32> -> vector<4x288xf32>
    %27 = arith.addf %22, %26 : vector<4x288xf32>
    %28 = vector.extract_strided_slice %1 {offsets = [0, 20], sizes = [4, 288], strides = [1, 1]} : vector<4x384xbf16> to vector<4x288xbf16>
    %c5 = arith.constant 5 : index
    %c0_18 = arith.constant 0 : index
    %c0_19 = arith.constant 0 : index
    %29 = vector.load %arg2[%c5, %c0_18, %c0_19] : memref<9x4x4xbf16, #tpu.memory_space<vmem>>, vector<1x4x4xbf16>
    %30 = vector.shape_cast %29 : vector<1x4x4xbf16> to vector<4x4xbf16>
    %cst_20 = arith.constant dense<0.000000e+00> : vector<4x288xf32>
    %31 = tpu.matmul %30, %28, %cst_20 {dimension_numbers = #tpu.dot_dimension_numbers<[1], [0], [0], [1], [0, 0, 1, 1], [], []>} : vector<4x4xbf16>, vector<4x288xbf16>, vector<4x288xf32> -> vector<4x288xf32>
    %32 = arith.addf %27, %31 : vector<4x288xf32>
    %33 = vector.extract_strided_slice %1 {offsets = [0, 36], sizes = [4, 288], strides = [1, 1]} : vector<4x384xbf16> to vector<4x288xbf16>
    %c6 = arith.constant 6 : index
    %c0_21 = arith.constant 0 : index
    %c0_22 = arith.constant 0 : index
    %34 = vector.load %arg2[%c6, %c0_21, %c0_22] : memref<9x4x4xbf16, #tpu.memory_space<vmem>>, vector<1x4x4xbf16>
    %35 = vector.shape_cast %34 : vector<1x4x4xbf16> to vector<4x4xbf16>
    %cst_23 = arith.constant dense<0.000000e+00> : vector<4x288xf32>
    %36 = tpu.matmul %35, %33, %cst_23 {dimension_numbers = #tpu.dot_dimension_numbers<[1], [0], [0], [1], [0, 0, 1, 1], [], []>} : vector<4x4xbf16>, vector<4x288xbf16>, vector<4x288xf32> -> vector<4x288xf32>
    %37 = arith.addf %32, %36 : vector<4x288xf32>
    %38 = vector.extract_strided_slice %1 {offsets = [0, 37], sizes = [4, 288], strides = [1, 1]} : vector<4x384xbf16> to vector<4x288xbf16>
    %c7 = arith.constant 7 : index
    %c0_24 = arith.constant 0 : index
    %c0_25 = arith.constant 0 : index
    %39 = vector.load %arg2[%c7, %c0_24, %c0_25] : memref<9x4x4xbf16, #tpu.memory_space<vmem>>, vector<1x4x4xbf16>
    %40 = vector.shape_cast %39 : vector<1x4x4xbf16> to vector<4x4xbf16>
    %cst_26 = arith.constant dense<0.000000e+00> : vector<4x288xf32>
    %41 = tpu.matmul %40, %38, %cst_26 {dimension_numbers = #tpu.dot_dimension_numbers<[1], [0], [0], [1], [0, 0, 1, 1], [], []>} : vector<4x4xbf16>, vector<4x288xbf16>, vector<4x288xf32> -> vector<4x288xf32>
    %42 = arith.addf %37, %41 : vector<4x288xf32>
    %43 = vector.extract_strided_slice %1 {offsets = [0, 38], sizes = [4, 288], strides = [1, 1]} : vector<4x384xbf16> to vector<4x288xbf16>
    %c8 = arith.constant 8 : index
    %c0_27 = arith.constant 0 : index
    %c0_28 = arith.constant 0 : index
    %44 = vector.load %arg2[%c8, %c0_27, %c0_28] : memref<9x4x4xbf16, #tpu.memory_space<vmem>>, vector<1x4x4xbf16>
    %45 = vector.shape_cast %44 : vector<1x4x4xbf16> to vector<4x4xbf16>
    %cst_29 = arith.constant dense<0.000000e+00> : vector<4x288xf32>
    %46 = tpu.matmul %45, %43, %cst_29 {dimension_numbers = #tpu.dot_dimension_numbers<[1], [0], [0], [1], [0, 0, 1, 1], [], []>} : vector<4x4xbf16>, vector<4x288xbf16>, vector<4x288xf32> -> vector<4x288xf32>
    %47 = arith.addf %42, %46 : vector<4x288xf32>
    %c0_30 = arith.constant 0 : index
    %c0_31 = arith.constant 0 : index
    %48 = vector.load %arg3[%c0_30, %c0_31] : memref<4x1xf32, #tpu.memory_space<vmem>>, vector<4x1xf32>
    %49 = vector.broadcast %48 : vector<4x1xf32> to vector<4x288xf32>
    %50 = arith.addf %47, %49 : vector<4x288xf32>
    %51 = arith.negf %50 : vector<4x288xf32>
    %52 = math.exp %51 : vector<4x288xf32>
    %cst_32 = arith.constant 1.000000e+00 : f32
    %53 = vector.broadcast %cst_32 : f32 to vector<4x288xf32>
    %54 = arith.addf %53, %52 : vector<4x288xf32>
    %55 = arith.divf %53, %54 : vector<4x288xf32>
    %56 = arith.mulf %50, %55 : vector<4x288xf32>
    %57 = arith.truncf %56 : vector<4x288xf32> to vector<4x288xbf16>
    %c0_33 = arith.constant 0 : index
    %c0_34 = arith.constant 0 : index
    %c0_35 = arith.constant 0 : index
    %58 = vector.load %arg4[%c0_33, %c0_34, %c0_35] : memref<1x4x288xbf16, #tpu.memory_space<vmem>>, vector<1x4x288xbf16>
    %59 = vector.shape_cast %58 : vector<1x4x288xbf16> to vector<4x288xbf16>
    %60 = vector.shape_cast %57 : vector<4x288xbf16> to vector<1x4x288xbf16>
    tpu.vector_store %arg4[%c0_33, %c0_34, %c0_35], %60 {strides = array<i32>} : memref<1x4x288xbf16, #tpu.memory_space<vmem>>, vector<1x4x288xbf16>,
    return
  }
  func.func @transform_0(%arg0: i32) -> (i32, i32, i32) {
    %c0_i32 = arith.constant 0 : i32
    %c0_i32_0 = arith.constant 0 : i32
    %c0_i32_1 = arith.constant 0 : i32
    return %arg0, %c0_i32, %c0_i32_0 : i32, i32, i32
  }
  func.func @transform_1(%arg0: i32) -> (i32, i32, i32) {
    %c0_i32 = arith.constant 0 : i32
    %c0_i32_0 = arith.constant 0 : i32
    %c0_i32_1 = arith.constant 0 : i32
    %c0_i32_2 = arith.constant 0 : i32
    return %c0_i32, %c0_i32_0, %c0_i32_1 : i32, i32, i32
  }
  func.func @transform_2(%arg0: i32) -> (i32, i32) {
    %c0_i32 = arith.constant 0 : i32
    %c0_i32_0 = arith.constant 0 : i32
    %c0_i32_1 = arith.constant 0 : i32
    return %c0_i32, %c0_i32_0 : i32, i32
  }
  func.func @transform_3(%arg0: i32) -> (i32, i32, i32) {
    %c0_i32 = arith.constant 0 : i32
    %c0_i32_0 = arith.constant 0 : i32
    %c0_i32_1 = arith.constant 0 : i32
    return %arg0, %c0_i32, %c0_i32_0 : i32, i32, i32
  }
}

module attributes {stable_mosaic.version = 11 : i64} {
  func.func @_pw_conv_kernel(%arg0: i32, %arg1: i32, %arg2: memref<1x8x256xbf16, #tpu.memory_space<vmem>>, %arg3: memref<8x8xbf16, #tpu.memory_space<vmem>>, %arg4: memref<8x1xf32, #tpu.memory_space<vmem>>, %arg5: memref<1x8x256xf32, #tpu.memory_space<vmem>>) attributes {dimension_semantics = [#tpu.dimension_semantics<parallel>, #tpu.dimension_semantics<parallel>], iteration_bounds = array<i64: 2, 1>, scalar_prefetch = 0 : i64, scratch_operands = 0 : i64, tpu.core_type = #tpu.core_type<tc>, window_params = [{transform_indices = @transform_0, window_bounds = array<i64: 1, 8, 256>}, {pipeline_mode = #tpu.pipeline_mode<synchronous>, transform_indices = @transform_1, window_bounds = array<i64: 8, 8>}, {pipeline_mode = #tpu.pipeline_mode<synchronous>, transform_indices = @transform_2, window_bounds = array<i64: 8, 1>}, {transform_indices = @transform_3, window_bounds = array<i64: 1, 8, 256>}]} {
    %c0 = arith.constant 0 : index
    %c0_0 = arith.constant 0 : index
    %0 = vector.load %arg3[%c0, %c0_0] : memref<8x8xbf16, #tpu.memory_space<vmem>>, vector<8x8xbf16>
    %c0_1 = arith.constant 0 : index
    %c0_2 = arith.constant 0 : index
    %c0_3 = arith.constant 0 : index
    %1 = vector.load %arg2[%c0_1, %c0_2, %c0_3] : memref<1x8x256xbf16, #tpu.memory_space<vmem>>, vector<1x8x256xbf16>
    %2 = vector.shape_cast %1 : vector<1x8x256xbf16> to vector<8x256xbf16>
    %cst = arith.constant dense<0.000000e+00> : vector<8x256xf32>
    %3 = tpu.matmul %0, %2, %cst {dimension_numbers = #tpu.dot_dimension_numbers<[1], [0], [0], [1], [0, 0, 1, 1], [], []>} : vector<8x8xbf16>, vector<8x256xbf16>, vector<8x256xf32> -> vector<8x256xf32>
    %c0_4 = arith.constant 0 : index
    %c0_5 = arith.constant 0 : index
    %4 = vector.load %arg4[%c0_4, %c0_5] : memref<8x1xf32, #tpu.memory_space<vmem>>, vector<8x1xf32>
    %5 = vector.broadcast %4 : vector<8x1xf32> to vector<8x256xf32>
    %6 = arith.addf %3, %5 : vector<8x256xf32>
    %7 = arith.negf %6 : vector<8x256xf32>
    %8 = math.exp %7 : vector<8x256xf32>
    %cst_6 = arith.constant 1.000000e+00 : f32
    %9 = vector.broadcast %cst_6 : f32 to vector<8x256xf32>
    %10 = arith.addf %9, %8 : vector<8x256xf32>
    %11 = arith.divf %9, %10 : vector<8x256xf32>
    %12 = arith.mulf %6, %11 : vector<8x256xf32>
    %c0_7 = arith.constant 0 : index
    %c0_8 = arith.constant 0 : index
    %c0_9 = arith.constant 0 : index
    %13 = vector.load %arg5[%c0_7, %c0_8, %c0_9] : memref<1x8x256xf32, #tpu.memory_space<vmem>>, vector<1x8x256xf32>
    %14 = vector.shape_cast %13 : vector<1x8x256xf32> to vector<8x256xf32>
    %15 = vector.shape_cast %12 : vector<8x256xf32> to vector<1x8x256xf32>
    tpu.vector_store %arg5[%c0_7, %c0_8, %c0_9], %15 {strides = array<i32>} : memref<1x8x256xf32, #tpu.memory_space<vmem>>, vector<1x8x256xf32>,
    return
  }
  func.func @transform_0(%arg0: i32, %arg1: i32) -> (i32, i32, i32) {
    %c0_i32 = arith.constant 0 : i32
    %c0_i32_0 = arith.constant 0 : i32
    return %arg0, %c0_i32, %arg1 : i32, i32, i32
  }
  func.func @transform_1(%arg0: i32, %arg1: i32) -> (i32, i32) {
    %c0_i32 = arith.constant 0 : i32
    %c0_i32_0 = arith.constant 0 : i32
    %c0_i32_1 = arith.constant 0 : i32
    return %c0_i32, %c0_i32_0 : i32, i32
  }
  func.func @transform_2(%arg0: i32, %arg1: i32) -> (i32, i32) {
    %c0_i32 = arith.constant 0 : i32
    %c0_i32_0 = arith.constant 0 : i32
    %c0_i32_1 = arith.constant 0 : i32
    return %c0_i32, %c0_i32_0 : i32, i32
  }
  func.func @transform_3(%arg0: i32, %arg1: i32) -> (i32, i32, i32) {
    %c0_i32 = arith.constant 0 : i32
    %c0_i32_0 = arith.constant 0 : i32
    return %arg0, %c0_i32, %arg1 : i32, i32, i32
  }
}

</mosaic_0001>

<bundles_post_ra>
// kernel: c2f_forward.4
= control target key start
LH: loop header
LB: loop body
LE: loop exit
PB: predicated region body
PF: predicated region fallthrough
CT: control target
= control target key end

     0   :  { %s489_s12 = smov 0   ;;  %s491_s13 = smov 0   ;;  %s532_s0 = inlined_call_operand.vmem [shape: bf16[2,4,256], index: 0, kind: input, shape index: {}]   ;;  %s533_s1 = inlined_call_operand.vmem [shape: bf16[8,4], index: 1, kind: input, shape index: {}]   ;;  %s534_s2 = inlined_call_operand.vmem [shape: f32[8,1], index: 2, kind: input, shape index: {}]   ;;  %s535_s3 = inlined_call_operand.vmem [shape: bf16[2,8,256], index: 3, kind: output, shape index: {}]  }
   0x1   :  { %s493_s14 = smov 0  }
   0x2 LB: > { %s25_s15 = sadd.s32 1, %s462_s13  ;;  %p394_p0 = scmp.ge.s32.totalorder %s466_s14, 1  ;;  %s466_s14 = sphi %s493_s14, %s13_s14   ;;  %s462_s13 = sphi %s491_s13, %s537_s13   ;;  %s458_s12 = sphi %s489_s12, %s536_s12  }
   0x3   : > { %p27_p1 = scmp.ge.s32.totalorder %s25_s15, 2  ;;  %p158_p2 = scmp.lt.s32.totalorder %s466_s14, 3 }
   0x5   : > { %s539_s15 = smov (%p27_p1, %s25_s15), 0  ;;  %p159_p3 = pnand %p394_p0, %p158_p2 }
   0x6   : > { %p191_p4 = scmp.lt.s32.totalorder (!%p159_p3), %s458_s12, 1  ;;  %v468_v0 = vmov (!%p159_p3), 0   ;;  %v213_v1 = vld [vmem:[%s534_s2] sm:$0xff] (!%p159_p3)  ;;  %vm232_vm0 = vcmask (!%p159_p3), 1041408   ;;  %vm228_vm1 = vcmask (!%p159_p3), 31744  }
   0x7   : > { %162 = sbr.rel (%p159_p3) target bundleno = 270 (0x10e), region = 32  ;;  %271 = vmatprep.mubr.bf16.mxu0 (!%p159_p3), %v468_v0  ;;  %435 = vset.pattern.permute.xlu0 (!%p159_p3), %v468_v0  ;;  %v211_v5 = vld [vmem:[%s533_s1] sm:$0xf] (!%p159_p3) }
   0x8   : > { %216 = vperm.xlu0 (!%p159_p3), %435, %v213_v1  }
   0xe   : > { %s541_s12 = smov (!%p191_p4, %s458_s12), 1 }
   0xf   : > { %s407_s18 = sshll.u32 %s541_s12, 2  ;;  %s408_s24 = sshll.u32 %s541_s12, 3 }
  0x10   : > { %s198_s21 = scalar_lea.vmem %s532_s0, %s407_s18  ;;  %s208_s27 = scalar_lea.vmem %s535_s3, %s408_s24 }
  0x11   : > { %v399_v2 = vld.sshfl [vmem:[%s198_s21] sm:$0x33 pattern:$0x76325410] }
  0x12   : > { %v227_v3 = vcombine.high %v399_v2, %v399_v2  ;;  %v234_v4 = vsel %vm232_vm0, %v399_v2, 0 }
  0x14   : > { %400 = vmatprep.subr.msk.bf16.mxu0 %vm232_vm0, %v227_v3 }
  0x15   : > { %240 = vmatpush1.bf16.msra.mxu0 %v234_v4 }
  0x18   : > { %401 = vmatmul.mubr.msk.bf16.vlgmr.msra.gmra.mrb[0].mxu0 %vm228_vm1, %v211_v5 }
  0x87   : > { %v217_v6 = vpop.permute.xlu0 %216 }
  0xeb   : > { %v273_v7 = vpop.f32.mrb[0].mxu0 }
  0xec   : > { %v274_v8 = vadd.f32 %v273_v7, %v217_v6  ;;  %v275_v9 = vpop.f32.mrb[1].mxu0 }
  0xed   : > { %v276_v10 = vadd.f32 %v275_v9, %v217_v6  ;;  %v277_v11 = vpop.f32.mrb[2].mxu0 }
  0xee   : > { %v402_v12 = vmul.f32 -1.442695, %v274_v8  ;;  %v278_v13 = vpop.f32.mrb[3].mxu0 }
  0xef   : > { %v403_v14 = vmul.f32 -1.442695, %v276_v10 }
  0xf0   : > { %436 = vpow2.f32 %v402_v12 }
  0xf1   : > { %438 = vpow2.f32 %v403_v14 }
  0xfa   : > { %v437_v15 = vpop.eup %436 }
  0xfb   : > { %v439_v16 = vpop.eup %438  ;;  %v286_v17 = vadd.f32 1.0, %v437_v15 }
  0xfc   : > { %v287_v18 = vadd.f32 1.0, %v439_v16 }
  0xfd   : > { %440 = vrcp.f32 %v286_v17 }
  0xfe   : > { %442 = vrcp.f32 %v287_v18 }
 0x107   : > { %v441_v19 = vpop.eup %440 }
 0x108   : > { %v443_v20 = vpop.eup %442  ;;  %v292_v21 = vmul.f32 %v441_v19, %v274_v8 }
 0x109   : > { %v293_v22 = vmul.f32 %v443_v20, %v276_v10 }
 0x10b   : > { %v409_v23 = vpack.c.bf16 %v293_v22, %v292_v21 }
 0x10d   : > { %302 = vst [vmem:[%s208_s27] sm:$0xff] %v409_v23 }
 0x10e PF: > { %s13_s14 = sadd.s32 1, %s466_s14   ;;  %s536_s12 = smov %s462_s13 }
 0x10f   : > { %p10_p5 = scmp.ge.s32.totalorder %s13_s14, 4   ;;  %s537_s13 = smov %s539_s15 }
 0x111   :  { %12 = sbr.rel (!%p10_p5) target bundleno = 2 (0x2), region = 62 }

// kernel: c2f_forward.5
= control target key start
LH: loop header
LB: loop body
LE: loop exit
PB: predicated region body
PF: predicated region fallthrough
CT: control target
= control target key end

     0   :  { %s494_s12 = smov 0   ;;  %s496_s13 = smov 0   ;;  %s540_s0 = inlined_call_operand.vmem [shape: bf16[2,4,256], index: 0, kind: input, shape index: {}]   ;;  %s541_s1 = inlined_call_operand.vmem [shape: bf16[4,4], index: 1, kind: input, shape index: {}]   ;;  %s542_s2 = inlined_call_operand.vmem [shape: f32[4,1], index: 2, kind: input, shape index: {}]   ;;  %s543_s3 = inlined_call_operand.vmem [shape: bf16[2,4,256], index: 3, kind: output, shape index: {}]  }
   0x1   :  { %s498_s14 = smov 0  }
   0x2 LB: > { %s25_s15 = sadd.s32 1, %s467_s13  ;;  %p399_p0 = scmp.ge.s32.totalorder %s471_s14, 1  ;;  %s471_s14 = sphi %s498_s14, %s13_s14   ;;  %s467_s13 = sphi %s496_s13, %s545_s13   ;;  %s463_s12 = sphi %s494_s12, %s544_s12  }
   0x3   : > { %p27_p1 = scmp.ge.s32.totalorder %s25_s15, 2  ;;  %p158_p2 = scmp.lt.s32.totalorder %s471_s14, 3 }
   0x5   : > { %s547_s15 = smov (%p27_p1, %s25_s15), 0  ;;  %p159_p3 = pnand %p399_p0, %p158_p2 }
   0x6   : > { %p191_p4 = scmp.lt.s32.totalorder (!%p159_p3), %s463_s12, 1  ;;  %v473_v0 = vmov (!%p159_p3), 0   ;;  %v213_v1 = vld [vmem:[%s542_s2] sm:$0xf] (!%p159_p3)  ;;  %vm232_vm0 = vcmask (!%p159_p3), 1041408   ;;  %vm228_vm1 = vcmask (!%p159_p3), 31744  }
   0x7   : > { %162 = sbr.rel (%p159_p3) target bundleno = 270 (0x10e), region = 32  ;;  %271 = vmatprep.mubr.bf16.mxu0 (!%p159_p3), %v473_v0  ;;  %440 = vset.pattern.permute.xlu0 (!%p159_p3), %v473_v0  ;;  %v211_v5 = vld [vmem:[%s541_s1] sm:$0x3] (!%p159_p3) }
   0x8   : > { %216 = vperm.xlu0 (!%p159_p3), %440, %v213_v1  }
   0xe   : > { %s549_s12 = smov (!%p191_p4, %s463_s12), 1 }
   0xf   : > { %s413_s18 = sshll.u32 %s549_s12, 2 }
  0x10   : > { %s198_s21 = scalar_lea.vmem %s540_s0, %s413_s18  ;;  %s208_s26 = scalar_lea.vmem %s543_s3, %s413_s18 }
  0x11   : > { %v404_v2 = vld.sshfl [vmem:[%s198_s21] sm:$0x33 pattern:$0x76325410] }
  0x12   : > { %v227_v3 = vcombine.high %v404_v2, %v404_v2  ;;  %v234_v4 = vsel %vm232_vm0, %v404_v2, 0 }
  0x14   : > { %405 = vmatprep.subr.msk.bf16.mxu0 %vm232_vm0, %v227_v3 }
  0x15   : > { %240 = vmatpush1.bf16.msra.mxu0 %v234_v4 }
  0x18   : > { %406 = vmatmul.mubr.msk.bf16.vlgmr.msra.gmra.mrb[0].mxu0 %vm228_vm1, %v211_v5 }
  0x87   : > { %v217_v6 = vpop.permute.xlu0 %216 }
  0xeb   : > { %v273_v7 = vpop.f32.mrb[0].mxu0 }
  0xec   : > { %v274_v8 = vadd.f32 %v273_v7, %v217_v6  ;;  %v275_v9 = vpop.f32.mrb[1].mxu0 }
  0xed   : > { %v276_v10 = vadd.f32 %v275_v9, %v217_v6  ;;  %v277_v11 = vpop.f32.mrb[2].mxu0 }
  0xee   : > { %v407_v12 = vmul.f32 -1.442695, %v274_v8  ;;  %v278_v13 = vpop.f32.mrb[3].mxu0 }
  0xef   : > { %v408_v14 = vmul.f32 -1.442695, %v276_v10 }
  0xf0   : > { %441 = vpow2.f32 %v407_v12 }
  0xf1   : > { %443 = vpow2.f32 %v408_v14 }
  0xfa   : > { %v442_v15 = vpop.eup %441 }
  0xfb   : > { %v444_v16 = vpop.eup %443  ;;  %v286_v17 = vadd.f32 1.0, %v442_v15 }
  0xfc   : > { %v287_v18 = vadd.f32 1.0, %v444_v16 }
  0xfd   : > { %445 = vrcp.f32 %v286_v17 }
  0xfe   : > { %447 = vrcp.f32 %v287_v18 }
 0x107   : > { %v446_v19 = vpop.eup %445 }
 0x108   : > { %v448_v20 = vpop.eup %447  ;;  %v292_v21 = vmul.f32 %v446_v19, %v274_v8 }
 0x109   : > { %v293_v22 = vmul.f32 %v448_v20, %v276_v10 }
 0x10b   : > { %v409_v23 = vpack.c.bf16 %v293_v22, %v292_v21 }
 0x10d   : > { %410 = vst.sshfl [vmem:[%s208_s26] sm:$0x33 pattern:$0x76325410] %v409_v23 }
 0x10e PF: > { %s13_s14 = sadd.s32 1, %s471_s14   ;;  %s544_s12 = smov %s467_s13 }
 0x10f   : > { %p10_p5 = scmp.ge.s32.totalorder %s13_s14, 4   ;;  %s545_s13 = smov %s547_s15 }
 0x111   :  { %12 = sbr.rel (!%p10_p5) target bundleno = 2 (0x2), region = 62 }

// kernel: c2f_forward.6
= control target key start
LH: loop header
LB: loop body
LE: loop exit
PB: predicated region body
PF: predicated region fallthrough
CT: control target
= control target key end

     0   :  { %s1447_s12 = smov 0   ;;  %s1592_s0 = inlined_call_operand.vmem [shape: bf16[2,4,384], index: 0, kind: input, shape index: {}]   ;;  %s1593_s1 = inlined_call_operand.vmem [shape: bf16[9,4,4], index: 1, kind: input, shape index: {}]   ;;  %s1594_s2 = inlined_call_operand.vmem [shape: f32[4,1], index: 2, kind: input, shape index: {}]   ;;  %s1595_s3 = inlined_call_operand.vmem [shape: bf16[2,4,288], index: 3, kind: output, shape index: {}]  }
   0x1 LB: > { %s1252_s13 = sadd.s32 4294967295, %s1413_s12   ;;  %p1256_p0 = scmp.ge.s32.totalorder %s1413_s12, 1  ;;  %s1413_s12 = sphi %s1447_s12, %s13_s12  }
   0x2   : > { %p137_p1 = scmp.lt.s32.totalorder %s1413_s12, 3 }
   0x4   : > { %p138_p2 = pnand %p1256_p0, %p137_p1 }
   0x5   : > { %p161_p3 = scmp.lt.s32.totalorder (!%p138_p2), %s1252_s13, 1  ;;  %v181_v0 = vlaneseq (!%p138_p2)  ;;  %v1415_v1 = vmov (!%p138_p2), 1983009808   ;;  %v1416_v3 = vmov (!%p138_p2), 0.0   ;;  %vm1417_vm0 = vmmov (!%p138_p2), 0   ;;  %s1419_s18 = smov (!%p138_p2), 127  }
   0x6   : > { %141 = sbr.rel (%p138_p2) target bundleno = 460 (0x1cc), region = 32  ;;  %v179_v2 = vunpack.c.l.s4 (!%p138_p2), %v1415_v1  ;;  %1318 = vmatprep.subr.bf16.mxu1 (!%p138_p2), %v1416_v3  ;;  %1320 = vmatprep.mubr.msk.bf16.mxu1 (!%p138_p2), %vm1417_vm0, %v1416_v3  ;;  %v1418_v6 = vmov (!%p138_p2), 0   ;;  %s1420_s19 = smov (!%p138_p2), 126   ;;  %v1139_v13 = vld [vmem:[%s1594_s2] sm:$0xf] (!%p138_p2)  ;;  %vm206_vm1 = vcmask (!%p138_p2), 1041408  }
   0x7   : > { %v182_v4 = vshrl.u32 (!%p138_p2), %v181_v0, 7  ;;  %248 = vmatprep.mubr.bf16.mxu0 (!%p138_p2), %v1418_v6  ;;  %1393 = vset.pattern.permute.xlu0 (!%p138_p2), %v1418_v6  ;;  %s1421_s20 = smov (!%p138_p2), 110   ;;  %s1422_s21 = smov (!%p138_p2), 109   ;;  %vm199_vm2 = vcmask (!%p138_p2), 1039360   ;;  %v1259_v18 = vld [vmem:[%s1593_s1 + $0x2] sm:$0x3] (!%p138_p2) }
   0x8   : > { %v180_v5 = vunpack.c.0.s8 (!%p138_p2), %v179_v2  ;;  %s1423_s22 = smov (!%p138_p2), 108   ;;  %s1424_s23 = smov (!%p138_p2), 92   ;;  %vm202_vm3 = vcmask (!%p138_p2), 31744   ;;  %vm398_vm4 = vcmask (!%p138_p2), 1031168   ;;  %v173_v28 = vld [vmem:[%s1593_s1] sm:$0x3] (!%p138_p2) }
   0x9   : > { %s1425_s24 = smov (!%p138_p2), 91   ;;  %s1426_s25 = smov (!%p138_p2), 90   ;;  %vm505_vm5 = vcmask (!%p138_p2), 900096   ;;  %v1266_v37 = vld [vmem:[%s1593_s1 + $0x4] sm:$0x3] (!%p138_p2)  ;;  %vm612_vm6 = vcmask (!%p138_p2), 891904  }
   0xa   : > { %v1463_v7 = vsub.s32 (!%p138_p2), %v180_v5, %v182_v4  ;;  %v1270_v46 = vld [vmem:[%s1593_s1 + $0x6] sm:$0x3] (!%p138_p2)  ;;  %vm719_vm7 = vcmask (!%p138_p2), 883712   ;;  %v1274_v54 = vld [vmem:[%s1593_s1 + $0x8] sm:$0x3] (!%p138_p2)  ;;  %vm826_vm8 = vcmask (!%p138_p2), 752640  }
   0xb   : > { %v1278_v62 = vld [vmem:[%s1593_s1 + $0xa] sm:$0x3] (!%p138_p2)  ;;  %vm933_vm9 = vcmask (!%p138_p2), 744448   ;;  %vm1040_vm10 = vcmask (!%p138_p2), 736256   ;;  %vm1192_vm11 = vcmask (!%p138_p2), 1043458   ;;  %vm1194_vm13 = vcmask (!%p138_p2), 259076  }
   0xc   : > { %vm1193_vm12 = vmor (!%p138_p2), %vm1192_vm11, %vm206_vm1 }
   0xd   : > { %s1597_s13 = smov (!%p161_p3, %s1252_s13), 1  ;;  %vm1195_vm14 = vmor %vm1194_vm13, %vm1193_vm12 }
   0xe   : > { %s1372_s14 = smul.u32 6, %s1597_s13 }
  0x10   : > { %s165_s17 = scalar_lea.vmem %s1592_s0, %s1372_s14 }
  0x11   : > { %v172_v8 = vld [vmem:[%s165_s17] sm:$0x3f] }
  0x12   : > { %v184_v9 = vrot.slane %v172_v8, %v1463_v7  ;;  %v177_v10 = vcombine.high %v172_v8, %v172_v8  ;;  %v1282_v8 = vld [vmem:[%s1593_s1 + $0xc] sm:$0x3] }
  0x14   : > { %193 = vrot.lane.b32.xlu0 %v184_v9, %s1419_s18  ;;  %v191_v11 = vrot.slane %v177_v10, %v1463_v7  ;;  %v192_v12 = vcombine.high %v184_v9, %v184_v9  ;;  %v301_v24 = vsel %vm206_vm1, %v184_v9, 0 }
  0x16   : > { %197 = vrot.lane.b32.xlu1 %v191_v11, %s1419_s18  ;;  %v307_v21 = vsel %vm206_vm1, %v191_v11, 0 }
  0x18   : > { %195 = vrot.lane.b32.xlu0 %v192_v12, %s1419_s18 }
  0x1a   : > { %392 = vrot.lane.b32.xlu1 %v184_v9, %s1420_s19 }
  0x1c   : > { %394 = vrot.lane.b32.xlu0 %v192_v12, %s1420_s19 }
  0x1e   : > { %396 = vrot.lane.b32.xlu1 %v191_v11, %s1420_s19 }
  0x20   : > { %499 = vrot.lane.b32.xlu0 %v184_v9, %s1421_s20 }
  0x22   : > { %501 = vrot.lane.b32.xlu1 %v192_v12, %s1421_s20 }
  0x24   : > { %503 = vrot.lane.b32.xlu0 %v191_v11, %s1421_s20 }
  0x26   : > { %606 = vrot.lane.b32.xlu1 %v184_v9, %s1422_s21 }
  0x28   : > { %608 = vrot.lane.b32.xlu0 %v192_v12, %s1422_s21 }
  0x2a   : > { %610 = vrot.lane.b32.xlu1 %v191_v11, %s1422_s21 }
  0x2c   : > { %713 = vrot.lane.b32.xlu0 %v184_v9, %s1423_s22 }
  0x2e   : > { %715 = vrot.lane.b32.xlu1 %v192_v12, %s1423_s22 }
  0x30   : > { %717 = vrot.lane.b32.xlu0 %v191_v11, %s1423_s22 }
  0x32   : > { %820 = vrot.lane.b32.xlu1 %v184_v9, %s1424_s23 }
  0x34   : > { %822 = vrot.lane.b32.xlu0 %v192_v12, %s1424_s23 }
  0x36   : > { %824 = vrot.lane.b32.xlu1 %v191_v11, %s1424_s23 }
  0x38   : > { %927 = vrot.lane.b32.xlu0 %v184_v9, %s1425_s24 }
  0x3a   : > { %929 = vrot.lane.b32.xlu1 %v192_v12, %s1425_s24 }
  0x3c   : > { %931 = vrot.lane.b32.xlu0 %v191_v11, %s1425_s24  ;;  %s170_s24 = scalar_lea.vmem %s1595_s3, %s1372_s14 }
  0x3e   : > { %1034 = vrot.lane.b32.xlu1 %v184_v9, %s1426_s25 }
  0x40   : > { %1036 = vrot.lane.b32.xlu0 %v192_v12, %s1426_s25 }
  0x42   : > { %1038 = vrot.lane.b32.xlu1 %v191_v11, %s1426_s25 }
  0x44   : > { %1142 = vperm.xlu0 %1393, %v1139_v13  }
  0x86   : > { %v194_v14 = vpop.permute.xlu0 %193 }
  0x88   : > { %v198_v15 = vpop.permute.xlu1 %197 }
  0x89   : > { %v214_v16 = vsel %vm206_vm1, %v198_v15, 0 }
  0x8a   : > { %v196_v17 = vpop.permute.xlu0 %195  ;;  %1319 = vmatpush3.bf16.msra.mxu1 %v214_v16 }
  0x8b   : > { %v201_v19 = vsel %vm199_vm2, %v196_v17, %v198_v15  ;;  %v200_v20 = vsel %vm199_vm2, %v194_v14, %v196_v17  ;;  %1324 = vmatprep.subr.bf16.mxu1 %v1416_v3  ;;  %v1286_v15 = vld [vmem:[%s1593_s1 + $0xe] sm:$0x3] }
  0x8c   : > { %1260 = vmatprep.subr.msk.bf16.mxu0 %vm206_vm1, %v201_v19  ;;  %v208_v22 = vsel %vm206_vm1, %v200_v20, 0  ;;  %v393_v23 = vpop.permute.xlu1 %392  ;;  %v1290_v19 = vld [vmem:[%s1593_s1 + $0x10] sm:$0x3] }
  0x8d   : > { %217 = vmatpush1.bf16.msra.mxu0 %v208_v22  ;;  %1321 = vmatmul.mubr.msk.bf16.vlgmr.msra.gmra.mrb[0].mxu1 %vm202_vm3, %v1259_v18 }
  0x8e   : > { %1263 = vmatprep.subr.msk.bf16.mxu0 %vm206_vm1, %v192_v12  ;;  %v395_v25 = vpop.permute.xlu0 %394  ;;  %1325 = vmatpush3.bf16.msra.mxu1 %v307_v21 }
  0x8f   : > { %1326 = vmatprep.mubr.msk.bf16.mxu1 %vm1417_vm0, %v1416_v3  ;;  %1330 = vmatprep.subr.bf16.mxu1 %v1416_v3  ;;  %v399_v30 = vsel %vm398_vm4, %v393_v23, %v395_v25 }
  0x90   : > { %1261 = vmatmul.mubr.msk.bf16.vlgmr.msra.gmra.mrb[0].mxu0 %vm202_vm3, %v1259_v18  ;;  %v397_v26 = vpop.permute.xlu1 %396  ;;  %v405_v33 = vsel %vm206_vm1, %v399_v30, 0 }
  0x91   : > { %310 = vmatpush1.bf16.msra.mxu0 %v301_v24  ;;  %v400_v27 = vsel %vm398_vm4, %v395_v25, %v397_v26  ;;  %341 = vmatprep.mubr.bf16.mxu0 %v1418_v6  ;;  %v411_v31 = vsel %vm206_vm1, %v397_v26, 0 }
  0x92   : > { %1267 = vmatprep.subr.msk.bf16.mxu0 %vm206_vm1, %v400_v27  ;;  %v500_v29 = vpop.permute.xlu0 %499 }
  0x94   : > { %v502_v32 = vpop.permute.xlu1 %501 }
  0x95   : > { %1327 = vmatmul.mubr.msk.bf16.vlgmr.msra.gmra.mrb[4].mxu1 %vm202_vm3, %v173_v28  ;;  %v506_v39 = vsel %vm505_vm5, %v500_v29, %v502_v32 }
  0x96   : > { %1331 = vmatpush3.bf16.msra.mxu1 %v411_v31  ;;  %1332 = vmatprep.mubr.msk.bf16.mxu1 %vm1417_vm0, %v1416_v3  ;;  %v504_v34 = vpop.permute.xlu0 %503  ;;  %v512_v42 = vsel %vm206_vm1, %v506_v39, 0 }
  0x97   : > { %v507_v35 = vsel %vm505_vm5, %v502_v32, %v504_v34  ;;  %1336 = vmatprep.subr.bf16.mxu1 %v1416_v3  ;;  %v518_v40 = vsel %vm206_vm1, %v504_v34, 0 }
  0x98   : > { %1264 = vmatmul.mubr.msk.bf16.vlgmr.msra.gmra.mrb[4].mxu0 %vm202_vm3, %v173_v28  ;;  %v607_v36 = vpop.permute.xlu1 %606 }
  0x99   : > { %414 = vmatpush1.bf16.msra.mxu0 %v405_v33  ;;  %445 = vmatprep.mubr.bf16.mxu0 %v1418_v6 }
  0x9a   : > { %1271 = vmatprep.subr.msk.bf16.mxu0 %vm206_vm1, %v507_v35  ;;  %v609_v38 = vpop.permute.xlu0 %608 }
  0x9b   : > { %v613_v47 = vsel %vm612_vm6, %v607_v36, %v609_v38 }
  0x9c   : > { %v611_v41 = vpop.permute.xlu1 %610  ;;  %v619_v50 = vsel %vm206_vm1, %v613_v47, 0 }
  0x9d   : > { %1333 = vmatmul.mubr.msk.bf16.vlgmr.msra.gmra.mrb[8].mxu1 %vm202_vm3, %v1266_v37  ;;  %v614_v44 = vsel %vm612_vm6, %v609_v38, %v611_v41  ;;  %v625_v48 = vsel %vm206_vm1, %v611_v41, 0 }
  0x9e   : > { %1337 = vmatpush3.bf16.msra.mxu1 %v518_v40  ;;  %1338 = vmatprep.mubr.msk.bf16.mxu1 %vm1417_vm0, %v1416_v3  ;;  %v714_v43 = vpop.permute.xlu0 %713 }
  0x9f   : > { %1342 = vmatprep.subr.bf16.mxu1 %v1416_v3 }
  0xa0   : > { %1268 = vmatmul.mubr.msk.bf16.vlgmr.msra.gmra.mrb[8].mxu0 %vm202_vm3, %v1266_v37  ;;  %v716_v45 = vpop.permute.xlu1 %715 }
  0xa1   : > { %521 = vmatpush1.bf16.msra.mxu0 %v512_v42  ;;  %552 = vmatprep.mubr.bf16.mxu0 %v1418_v6  ;;  %v720_v55 = vsel %vm719_vm7, %v714_v43, %v716_v45 }
  0xa2   : > { %1275 = vmatprep.subr.msk.bf16.mxu0 %vm206_vm1, %v614_v44  ;;  %v718_v49 = vpop.permute.xlu0 %717  ;;  %v726_v58 = vsel %vm206_vm1, %v720_v55, 0 }
  0xa3   : > { %v721_v52 = vsel %vm719_vm7, %v716_v45, %v718_v49  ;;  %v732_v56 = vsel %vm206_vm1, %v718_v49, 0 }
  0xa4   : > { %v821_v51 = vpop.permute.xlu1 %820 }
  0xa5   : > { %1339 = vmatmul.mubr.msk.bf16.vlgmr.msra.gmra.mrb[12].mxu1 %vm202_vm3, %v1270_v46 }
  0xa6   : > { %1343 = vmatpush3.bf16.msra.mxu1 %v625_v48  ;;  %1344 = vmatprep.mubr.msk.bf16.mxu1 %vm1417_vm0, %v1416_v3  ;;  %v823_v53 = vpop.permute.xlu0 %822 }
  0xa7   : > { %1348 = vmatprep.subr.bf16.mxu1 %v1416_v3  ;;  %v827_v63 = vsel %vm826_vm8, %v821_v51, %v823_v53 }
  0xa8   : > { %1272 = vmatmul.mubr.msk.bf16.vlgmr.msra.gmra.mrb[12].mxu0 %vm202_vm3, %v1270_v46  ;;  %v825_v57 = vpop.permute.xlu1 %824  ;;  %v833_v2 = vsel %vm206_vm1, %v827_v63, 0 }
  0xa9   : > { %628 = vmatpush1.bf16.msra.mxu0 %v619_v50  ;;  %659 = vmatprep.mubr.bf16.mxu0 %v1418_v6  ;;  %v828_v60 = vsel %vm826_vm8, %v823_v53, %v825_v57  ;;  %v839_v0 = vsel %vm206_vm1, %v825_v57, 0 }
  0xaa   : > { %1279 = vmatprep.subr.msk.bf16.mxu0 %vm206_vm1, %v721_v52  ;;  %v928_v59 = vpop.permute.xlu0 %927 }
  0xac   : > { %v930_v61 = vpop.permute.xlu1 %929 }
  0xad   : > { %1345 = vmatmul.mubr.msk.bf16.vlgmr.msra.gmra.mrb[16].mxu1 %vm202_vm3, %v1274_v54  ;;  %v934_v9 = vsel %vm933_vm9, %v928_v59, %v930_v61 }
  0xae   : > { %1349 = vmatpush3.bf16.msra.mxu1 %v732_v56  ;;  %1350 = vmatprep.mubr.msk.bf16.mxu1 %vm1417_vm0, %v1416_v3  ;;  %v932_v1 = vpop.permute.xlu0 %931  ;;  %v940_v13 = vsel %vm206_vm1, %v934_v9, 0 }
  0xaf   : > { %1354 = vmatprep.subr.bf16.mxu1 %v1416_v3  ;;  %v935_v5 = vsel %vm933_vm9, %v930_v61, %v932_v1  ;;  %v946_v10 = vsel %vm206_vm1, %v932_v1, 0 }
  0xb0   : > { %1276 = vmatmul.mubr.msk.bf16.vlgmr.msra.gmra.mrb[16].mxu0 %vm202_vm3, %v1274_v54  ;;  %v1035_v4 = vpop.permute.xlu1 %1034 }
  0xb1   : > { %735 = vmatpush1.bf16.msra.mxu0 %v726_v58  ;;  %766 = vmatprep.mubr.bf16.mxu0 %v1418_v6 }
  0xb2   : > { %1283 = vmatprep.subr.msk.bf16.mxu0 %vm206_vm1, %v828_v60  ;;  %v1037_v11 = vpop.permute.xlu0 %1036 }
  0xb3   : > { %v1041_v16 = vsel %vm1040_vm10, %v1035_v4, %v1037_v11 }
  0xb4   : > { %v1039_v12 = vpop.permute.xlu1 %1038  ;;  %v1047_v18 = vsel %vm206_vm1, %v1041_v16, 0 }
  0xb5   : > { %1351 = vmatmul.mubr.msk.bf16.vlgmr.msra.gmra.mrb[20].mxu1 %vm202_vm3, %v1278_v62  ;;  %v1042_v14 = vsel %vm1040_vm10, %v1037_v11, %v1039_v12  ;;  %v1053_v17 = vsel %vm206_vm1, %v1039_v12, 0 }
  0xb6   : > { %1355 = vmatpush3.bf16.msra.mxu1 %v839_v0  ;;  %1356 = vmatprep.mubr.msk.bf16.mxu1 %vm1417_vm0, %v1416_v3 }
  0xb7   : > { %1360 = vmatprep.subr.bf16.mxu1 %v1416_v3 }
  0xb8   : > { %1280 = vmatmul.mubr.msk.bf16.vlgmr.msra.gmra.mrb[20].mxu0 %vm202_vm3, %v1278_v62 }
  0xb9   : > { %842 = vmatpush1.bf16.msra.mxu0 %v833_v2  ;;  %873 = vmatprep.mubr.bf16.mxu0 %v1418_v6 }
  0xba   : > { %1287 = vmatprep.subr.msk.bf16.mxu0 %vm206_vm1, %v935_v5 }
  0xbd   : > { %1357 = vmatmul.mubr.msk.bf16.vlgmr.msra.gmra.mrb[24].mxu1 %vm202_vm3, %v1282_v8 }
  0xbe   : > { %1361 = vmatpush3.bf16.msra.mxu1 %v946_v10  ;;  %1362 = vmatprep.mubr.msk.bf16.mxu1 %vm1417_vm0, %v1416_v3 }
  0xbf   : > { %1366 = vmatprep.subr.bf16.mxu1 %v1416_v3 }
  0xc0   : > { %1284 = vmatmul.mubr.msk.bf16.vlgmr.msra.gmra.mrb[24].mxu0 %vm202_vm3, %v1282_v8 }
  0xc1   : > { %949 = vmatpush1.bf16.msra.mxu0 %v940_v13  ;;  %980 = vmatprep.mubr.bf16.mxu0 %v1418_v6 }
  0xc2   : > { %1291 = vmatprep.subr.msk.bf16.mxu0 %vm206_vm1, %v1042_v14 }
  0xc5   : > { %1363 = vmatmul.mubr.msk.bf16.vlgmr.msra.gmra.mrb[28].mxu1 %vm202_vm3, %v1286_v15 }
  0xc6   : > { %1367 = vmatpush3.bf16.msra.mxu1 %v1053_v17  ;;  %1368 = vmatprep.mubr.msk.bf16.mxu1 %vm1417_vm0, %v1416_v3 }
  0xc8   : > { %1288 = vmatmul.mubr.msk.bf16.vlgmr.msra.gmra.mrb[28].mxu0 %vm202_vm3, %v1286_v15 }
  0xc9   : > { %1056 = vmatpush1.bf16.msra.mxu0 %v1047_v18  ;;  %1087 = vmatprep.mubr.bf16.mxu0 %v1418_v6 }
  0xcd   : > { %1369 = vmatmul.mubr.msk.bf16.vlgmr.msra.gmra.mrb[32].mxu1 %vm202_vm3, %v1290_v19 }
  0xd0   : > { %1292 = vmatmul.mubr.msk.bf16.vlgmr.msra.gmra.mrb[32].mxu0 %vm202_vm3, %v1290_v19 }
 0x160   : > { %v291_v20 = vpop.f32.mrb[0].mxu1 }
 0x161   : > { %v1322_v21 = vpop.f32.mrb[1].mxu1 }
 0x162   : > { %v294_v22 = vpop.f32.mrb[2].mxu1 }
 0x163   : > { %v250_v23 = vpop.f32.mrb[0].mxu0  ;;  %v1323_v24 = vpop.f32.mrb[3].mxu1 }
 0x164   : > { %v252_v25 = vpop.f32.mrb[1].mxu0 }
 0x165   : > { %v254_v3 = vpop.f32.mrb[2].mxu0 }
 0x166   : > { %v255_v26 = vpop.f32.mrb[3].mxu0 }
 0x168   : > { %v384_v27 = vpop.f32.mrb[4].mxu1 }
 0x169   : > { %v385_v28 = vadd.f32 %v384_v27, %v291_v20  ;;  %v1328_v29 = vpop.f32.mrb[5].mxu1 }
 0x16a   : > { %v387_v6 = vpop.f32.mrb[6].mxu1 }
 0x16b   : > { %v343_v30 = vpop.f32.mrb[4].mxu0  ;;  %v1329_v31 = vpop.f32.mrb[7].mxu1 }
 0x16c   : > { %v344_v32 = vadd.f32 %v343_v30, %v250_v23  ;;  %v345_v33 = vpop.f32.mrb[5].mxu0 }
 0x16d   : > { %v346_v34 = vadd.f32 %v345_v33, %v252_v25  ;;  %v347_v35 = vpop.f32.mrb[6].mxu0 }
 0x16e   : > { %v348_v36 = vpop.f32.mrb[7].mxu0 }
 0x170   : > { %v488_v37 = vpop.f32.mrb[8].mxu1 }
 0x171   : > { %v496_v38 = vadd.f32 %v488_v37, %v385_v28  ;;  %v1334_v39 = vpop.f32.mrb[9].mxu1 }
 0x172   : > { %v491_v40 = vpop.f32.mrb[10].mxu1 }
 0x173   : > { %v447_v41 = vpop.f32.mrb[8].mxu0  ;;  %v1335_v42 = vpop.f32.mrb[11].mxu1 }
 0x174   : > { %v494_v43 = vadd.f32 %v447_v41, %v344_v32  ;;  %v449_v44 = vpop.f32.mrb[9].mxu0  ;;  %v1143_v41 = vpop.permute.xlu0 %1142 }
 0x175   : > { %v495_v45 = vadd.f32 %v449_v44, %v346_v34  ;;  %v451_v46 = vpop.f32.mrb[10].mxu0 }
 0x176   : > { %v452_v47 = vpop.f32.mrb[11].mxu0 }
 0x178   : > { %v595_v48 = vpop.f32.mrb[12].mxu1 }
 0x179   : > { %v603_v49 = vadd.f32 %v595_v48, %v496_v38  ;;  %v1340_v50 = vpop.f32.mrb[13].mxu1 }
 0x17a   : > { %v598_v51 = vpop.f32.mrb[14].mxu1 }
 0x17b   : > { %v554_v52 = vpop.f32.mrb[12].mxu0  ;;  %v1341_v53 = vpop.f32.mrb[15].mxu1 }
 0x17c   : > { %v601_v54 = vadd.f32 %v554_v52, %v494_v43  ;;  %v556_v55 = vpop.f32.mrb[13].mxu0 }
 0x17d   : > { %v602_v56 = vadd.f32 %v556_v55, %v495_v45  ;;  %v558_v57 = vpop.f32.mrb[14].mxu0 }
 0x17e   : > { %v559_v58 = vpop.f32.mrb[15].mxu0 }
 0x180   : > { %v702_v59 = vpop.f32.mrb[16].mxu1 }
 0x181   : > { %v710_v60 = vadd.f32 %v702_v59, %v603_v49  ;;  %v1346_v61 = vpop.f32.mrb[17].mxu1 }
 0x182   : > { %v705_v62 = vpop.f32.mrb[18].mxu1 }
 0x183   : > { %v661_v63 = vpop.f32.mrb[16].mxu0  ;;  %v1347_v0 = vpop.f32.mrb[19].mxu1 }
 0x184   : > { %v708_v1 = vadd.f32 %v661_v63, %v601_v54  ;;  %v663_v2 = vpop.f32.mrb[17].mxu0 }
 0x185   : > { %v709_v4 = vadd.f32 %v663_v2, %v602_v56  ;;  %v665_v5 = vpop.f32.mrb[18].mxu0 }
 0x186   : > { %v666_v8 = vpop.f32.mrb[19].mxu0 }
 0x188   : > { %v809_v9 = vpop.f32.mrb[20].mxu1 }
 0x189   : > { %v817_v10 = vadd.f32 %v809_v9, %v710_v60  ;;  %v1352_v11 = vpop.f32.mrb[21].mxu1 }
 0x18a   : > { %v812_v12 = vpop.f32.mrb[22].mxu1 }
 0x18b   : > { %v768_v13 = vpop.f32.mrb[20].mxu0  ;;  %v1353_v14 = vpop.f32.mrb[23].mxu1 }
 0x18c   : > { %v815_v15 = vadd.f32 %v768_v13, %v708_v1  ;;  %v770_v16 = vpop.f32.mrb[21].mxu0 }
 0x18d   : > { %v816_v17 = vadd.f32 %v770_v16, %v709_v4  ;;  %v772_v18 = vpop.f32.mrb[22].mxu0 }
 0x18e   : > { %v773_v19 = vpop.f32.mrb[23].mxu0 }
 0x190   : > { %v916_v20 = vpop.f32.mrb[24].mxu1 }
 0x191   : > { %v924_v21 = vadd.f32 %v916_v20, %v817_v10  ;;  %v1358_v22 = vpop.f32.mrb[25].mxu1 }
 0x192   : > { %v919_v23 = vpop.f32.mrb[26].mxu1 }
 0x193   : > { %v875_v24 = vpop.f32.mrb[24].mxu0  ;;  %v1359_v25 = vpop.f32.mrb[27].mxu1 }
 0x194   : > { %v922_v3 = vadd.f32 %v875_v24, %v815_v15  ;;  %v877_v26 = vpop.f32.mrb[25].mxu0 }
 0x195   : > { %v923_v27 = vadd.f32 %v877_v26, %v816_v17  ;;  %v879_v28 = vpop.f32.mrb[26].mxu0 }
 0x196   : > { %v880_v29 = vpop.f32.mrb[27].mxu0 }
 0x198   : > { %v1023_v6 = vpop.f32.mrb[28].mxu1 }
 0x199   : > { %v1031_v30 = vadd.f32 %v1023_v6, %v924_v21  ;;  %v1364_v31 = vpop.f32.mrb[29].mxu1 }
 0x19a   : > { %v1026_v32 = vpop.f32.mrb[30].mxu1 }
 0x19b   : > { %v982_v33 = vpop.f32.mrb[28].mxu0  ;;  %v1365_v34 = vpop.f32.mrb[31].mxu1 }
 0x19c   : > { %v1029_v35 = vadd.f32 %v982_v33, %v922_v3  ;;  %v984_v36 = vpop.f32.mrb[29].mxu0 }
 0x19d   : > { %v1030_v37 = vadd.f32 %v984_v36, %v923_v27  ;;  %v986_v38 = vpop.f32.mrb[30].mxu0 }
 0x19e   : > { %v987_v39 = vpop.f32.mrb[31].mxu0 }
 0x1a0   : > { %v1130_v40 = vpop.f32.mrb[32].mxu1 }
 0x1a1   : > { %v1138_v42 = vadd.f32 %v1130_v40, %v1031_v30  ;;  %v1370_v43 = vpop.f32.mrb[33].mxu1 }
 0x1a2   : > { %v1133_v44 = vpop.f32.mrb[34].mxu1 }
 0x1a3   : > { %v1147_v45 = vadd.f32 %v1143_v41, %v1138_v42  ;;  %v1089_v46 = vpop.f32.mrb[32].mxu0  ;;  %v1371_v47 = vpop.f32.mrb[35].mxu1 }
 0x1a4   : > { %v1136_v48 = vadd.f32 %v1089_v46, %v1029_v35  ;;  %v1091_v49 = vpop.f32.mrb[33].mxu0 }
 0x1a5   : > { %v1296_v50 = vmul.f32 -1.442695, %v1147_v45  ;;  %v1137_v51 = vadd.f32 %v1091_v49, %v1030_v37  ;;  %v1093_v52 = vpop.f32.mrb[34].mxu0 }
 0x1a6   : > { %v1145_v53 = vadd.f32 %v1143_v41, %v1136_v48  ;;  %v1094_v54 = vpop.f32.mrb[35].mxu0 }
 0x1a7   : > { %1395 = vpow2.f32 %v1296_v50  ;;  %v1146_v55 = vadd.f32 %v1143_v41, %v1137_v51 }
 0x1a8   : > { %v1294_v56 = vmul.f32 -1.442695, %v1145_v53 }
 0x1a9   : > { %v1295_v57 = vmul.f32 -1.442695, %v1146_v55 }
 0x1aa   : > { %1397 = vpow2.f32 %v1294_v56 }
 0x1ab   : > { %1399 = vpow2.f32 %v1295_v57 }
 0x1b1   : > { %v1396_v58 = vpop.eup %1395 }
 0x1b2   : > { %v1159_v59 = vadd.f32 1.0, %v1396_v58 }
 0x1b4   : > { %v1398_v60 = vpop.eup %1397  ;;  %1401 = vrcp.f32 %v1159_v59 }
 0x1b5   : > { %v1400_v61 = vpop.eup %1399  ;;  %v1157_v62 = vadd.f32 1.0, %v1398_v60 }
 0x1b6   : > { %v1158_v63 = vadd.f32 1.0, %v1400_v61 }
 0x1b7   : > { %1403 = vrcp.f32 %v1157_v62 }
 0x1b8   : > { %1405 = vrcp.f32 %v1158_v63 }
 0x1be   : > { %v1402_v0 = vpop.eup %1401 }
 0x1bf   : > { %v1168_v1 = vmul.f32 %v1402_v0, %v1147_v45 }
 0x1c1   : > { %v1404_v2 = vpop.eup %1403  ;;  %v1171_v8 = vpack.c.bf16 %v1168_v1, %v1168_v1 }
 0x1c2   : > { %v1406_v4 = vpop.eup %1405  ;;  %v1166_v5 = vmul.f32 %v1404_v2, %v1145_v53 }
 0x1c3   : > { %v1167_v9 = vmul.f32 %v1406_v4, %v1146_v55  ;;  %v1189_v11 = vrot.slane %v1171_v8, %v1463_v7 }
 0x1c5   : > { %v1297_v10 = vpack.c.bf16 %v1167_v9, %v1166_v5 }
 0x1c7   : > { %v1182_v12 = vrot.slane %v1297_v10, %v1463_v7 }
 0x1c9   : > { %v1190_v13 = vcombine.low %v1182_v12, %v1189_v11 }
 0x1cb   : > { %1196 = vst.msk [vmem:[%s170_s24] sm:$0x3f] %vm1195_vm14, %v1190_v13 }
 0x1cc PF: > { %s13_s12 = sadd.s32 1, %s1413_s12  }
 0x1cd   : > { %p10_p4 = scmp.ge.s32.totalorder %s13_s12, 4  }
 0x1cf   :  { %12 = sbr.rel (!%p10_p4) target bundleno = 1 (0x1), region = 70 }

// kernel: c2f_forward.7
= control target key start
LH: loop header
LB: loop body
LE: loop exit
PB: predicated region body
PF: predicated region fallthrough
CT: control target
= control target key end

     0   :  { %s479_s12 = smov 0   ;;  %s481_s13 = smov 0   ;;  %s522_s0 = inlined_call_operand.vmem [shape: bf16[2,8,256], index: 0, kind: input, shape index: {}]   ;;  %s523_s1 = inlined_call_operand.vmem [shape: bf16[8,8], index: 1, kind: input, shape index: {}]   ;;  %s524_s2 = inlined_call_operand.vmem [shape: f32[8,1], index: 2, kind: input, shape index: {}]   ;;  %s525_s3 = inlined_call_operand.vmem [shape: f32[2,8,256], index: 3, kind: output, shape index: {}]  }
   0x1   :  { %s483_s14 = smov 0  }
   0x2 LB: > { %s25_s15 = sadd.s32 1, %s452_s13  ;;  %p383_p0 = scmp.ge.s32.totalorder %s456_s14, 1  ;;  %s456_s14 = sphi %s483_s14, %s13_s14   ;;  %s452_s13 = sphi %s481_s13, %s527_s13   ;;  %s448_s12 = sphi %s479_s12, %s526_s12  }
   0x3   : > { %p27_p1 = scmp.ge.s32.totalorder %s25_s15, 2  ;;  %p158_p2 = scmp.lt.s32.totalorder %s456_s14, 3 }
   0x5   : > { %s529_s15 = smov (%p27_p1, %s25_s15), 0  ;;  %p159_p3 = pnand %p383_p0, %p158_p2 }
   0x6   : > { %p191_p4 = scmp.lt.s32.totalorder (!%p159_p3), %s448_s12, 1  ;;  %v458_v0 = vmov (!%p159_p3), 0   ;;  %v213_v1 = vld [vmem:[%s524_s2] sm:$0xff] (!%p159_p3)  ;;  %vm228_vm0 = vcmask (!%p159_p3), 1043456   ;;  %vm224_vm1 = vcmask (!%p159_p3), 64512  }
   0x7   : > { %162 = sbr.rel (%p159_p3) target bundleno = 268 (0x10c), region = 32  ;;  %267 = vmatprep.mubr.bf16.mxu0 (!%p159_p3), %v458_v0  ;;  %423 = vset.pattern.permute.xlu0 (!%p159_p3), %v458_v0  ;;  %v211_v6 = vld [vmem:[%s523_s1] sm:$0xf] (!%p159_p3) }
   0x8   : > { %216 = vperm.xlu0 (!%p159_p3), %423, %v213_v1  }
   0xe   : > { %s531_s12 = smov (!%p191_p4, %s448_s12), 1 }
   0xf   : > { %s396_s18 = sshll.u32 %s531_s12, 3  ;;  %s397_s24 = sshll.u32 %s531_s12, 4 }
  0x10   : > { %s198_s21 = scalar_lea.vmem %s522_s0, %s396_s18  ;;  %s208_s27 = scalar_lea.vmem %s525_s3, %s397_s24 }
  0x11   : > { %v212_v2 = vld [vmem:[%s198_s21] sm:$0xff] }
  0x12   : > { %v389_v3 = vcombine.high %v212_v2, %v212_v2  ;;  %v388_v4 = vcombine.low %v212_v2, %v212_v2 }
  0x14   : > { %390 = vmatprep.subr.msk.bf16.mxu0 %vm228_vm0, %v389_v3  ;;  %v230_v5 = vsel %vm228_vm0, %v388_v4, 0 }
  0x15   : > { %236 = vmatpush1.bf16.msra.mxu0 %v230_v5 }
  0x18   : > { %391 = vmatmul.mubr.msk.bf16.vlgmr.msra.gmra.mrb[0].mxu0 %vm224_vm1, %v211_v6 }
  0x87   : > { %v217_v7 = vpop.permute.xlu0 %216 }
  0xeb   : > { %v269_v8 = vpop.f32.mrb[0].mxu0 }
  0xec   : > { %v270_v9 = vadd.f32 %v269_v8, %v217_v7  ;;  %v271_v10 = vpop.f32.mrb[1].mxu0 }
  0xed   : > { %v272_v11 = vadd.f32 %v271_v10, %v217_v7  ;;  %v273_v12 = vpop.f32.mrb[2].mxu0 }
  0xee   : > { %v392_v13 = vmul.f32 -1.442695, %v270_v9  ;;  %v274_v14 = vpop.f32.mrb[3].mxu0 }
  0xef   : > { %v393_v15 = vmul.f32 -1.442695, %v272_v11 }
  0xf0   : > { %426 = vpow2.f32 %v392_v13 }
  0xf1   : > { %428 = vpow2.f32 %v393_v15 }
  0xfa   : > { %v427_v16 = vpop.eup %426 }
  0xfb   : > { %v429_v17 = vpop.eup %428  ;;  %v282_v18 = vadd.f32 1.0, %v427_v16 }
  0xfc   : > { %v283_v19 = vadd.f32 1.0, %v429_v17 }
  0xfd   : > { %430 = vrcp.f32 %v282_v18 }
  0xfe   : > { %432 = vrcp.f32 %v283_v19 }
 0x107   : > { %v431_v20 = vpop.eup %430 }
 0x108   : > { %v433_v21 = vpop.eup %432  ;;  %v288_v22 = vmul.f32 %v431_v20, %v270_v9 }
 0x109   : > { %v289_v23 = vmul.f32 %v433_v21, %v272_v11 }
 0x10a   : > { %290 = vst [vmem:[%s208_s27] sm:$0xff] %v288_v22 }
 0x10b   : > { %291 = vst [vmem:[%s208_s27 + $0x8] sm:$0xff] %v289_v23 }
 0x10c PF: > { %s13_s14 = sadd.s32 1, %s456_s14   ;;  %s526_s12 = smov %s452_s13 }
 0x10d   : > { %p10_p5 = scmp.ge.s32.totalorder %s13_s14, 4   ;;  %s527_s13 = smov %s529_s15 }
 0x10f   :  { %12 = sbr.rel (!%p10_p5) target bundleno = 2 (0x2), region = 62 }

</bundles_post_ra>
